<compile_context>
chip_gen: v7x
topology: tpu7x:2x2x1
jax: 0.10.0
libtpu: 0.0.40
codegen_flags: <defaults>
</compile_context>

<pallas_src>
import jax
import jax.numpy as jnp
from jax.experimental import pallas as pl
from jax.experimental.pallas import tpu as pltpu


def titanic_kernel(x_ref, w_ref, b_ref, o_ref):
    # Shapes (per tile):
    #   x_ref: (TB, 6)  row-major input tile (no wrapper transpose)
    #   w_ref: (1, 6)   fully composed weight row  (w1@w2@w3@w4) reshaped
    #   b_ref: (1, 1)   fully composed bias
    #   o_ref: (TB, 1)  output tile
    x = x_ref[...].astype(jnp.float32)                       # (TB, 6)
    w = w_ref[...].astype(jnp.float32)                       # (1, 6) broadcast over sublanes
    z = jnp.sum(x * w, axis=1, keepdims=True) + b_ref[...]   # (TB, 1): 6-wide lane (XLU) reduce
    z = jnp.clip(z, -30.0, 30.0)                             # keep exp finite for large |z|

    # sigmoid(z) = 1 / (1 + exp(-z)): exp + reciprocal on the EUP, one Newton step on the VALU
    # restores ~full f32 precision without a full divide sequence.
    e = jnp.exp(-z)
    d = 1.0 + e
    r = pl.reciprocal(d, approx=True)
    r = r * (2.0 - d * r)
    o_ref[...] = r.astype(o_ref.dtype)


def _pick_tile_b(B, cap=1024):
    """Largest 128-multiple divisor of B that is <= cap, preferring >= 2 grid steps (v7x 2 TCs)."""
    if B % 128 != 0:
        return B                                  # single whole-batch block (block dims == array dims)
    upper = min(cap, max(128, B // 2))            # force >= 2 steps whenever B >= 256
    best = None
    t = 128
    while t <= upper:
        if B % t == 0:
            best = t
        t += 128
    return best if best is not None else B


def titanic_forward(x, params, *, tile_b=None, use_bf16=False):
    """x: (B, 6) float32, row-major.  params: dict of weights/biases in (in, out) layout.
    Returns (B, 1).  Matches the PyTorch forward in eval mode (Dropout = identity)."""
    B, F = x.shape
    assert F == 6

    if tile_b is None:
        tile_b = _pick_tile_b(B)
    assert B % tile_b == 0, "batch must be a multiple of tile_b"
    assert tile_b == B or tile_b % 128 == 0, "tile_b must be a multiple of 128 or the whole batch"

    w1, b1 = params["w1"], params["b1"]   # (6, 122), (1, 122)
    w2, b2 = params["w2"], params["b2"]   # (122, 32), (1, 32)
    w3, b3 = params["w3"], params["b3"]   # (32, 2),  (1, 2)
    w4, b4 = params["w4"], params["b4"]   # (2, 1),   (1, 1)

    # Trace-time composition of the ENTIRE network (dropout = identity at inference).
    w_all = w1 @ w2 @ w3 @ w4                         # (6, 1)
    b_all = ((b1 @ w2 + b2) @ w3 + b3) @ w4 + b4      # (1, 1)
    w_row = w_all.reshape(1, 6)                       # (1, 6) row for lane-wise multiply

    if use_bf16:
        # Only a net win if the caller already supplies bf16 activations; accumulation stays f32.
        x_in = x.astype(jnp.bfloat16)
        w_row = w_row.astype(jnp.bfloat16)
    else:
        x_in = x

    out = pl.pallas_call(
        titanic_kernel,
        out_shape=jax.ShapeDtypeStruct((B, 1), jnp.float32),
        grid_spec=pltpu.PrefetchScalarGridSpec(
            num_scalar_prefetch=0,
            grid=(B // tile_b,),
            in_specs=[
                pl.BlockSpec((tile_b, 6), lambda i: (i, 0)),   # row-major x tile
                pl.BlockSpec((1, 6), lambda i: (0, 0)),        # composed weight (resident)
                pl.BlockSpec((1, 1), lambda i: (0, 0)),        # composed bias (resident)
            ],
            out_specs=pl.BlockSpec((tile_b, 1), lambda i: (i, 0)),
        ),
        compiler_params=pltpu.CompilerParams(
            dimension_semantics=("parallel",),
        ),
    )(x_in, w_row, b_all)

    return out


def init_params(key):
    """Deterministic parameter init; shapes follow the PyTorch module's __init__."""
    ks = jax.random.split(key, 8)

    def lin(kw, kb, fan_in, fan_out):
        # PyTorch default-like uniform(-1/sqrt(fan_in), 1/sqrt(fan_in))
        bound = 1.0 / jnp.sqrt(jnp.float32(fan_in))
        w = jax.random.uniform(kw, (fan_in, fan_out), jnp.float32, -bound, bound)
        b = jax.random.uniform(kb, (1, fan_out), jnp.float32, -bound, bound)
        return w, b

    w1, b1 = lin(ks[0], ks[1], 6, 122)
    w2, b2 = lin(ks[2], ks[3], 122, 32)
    w3, b3 = lin(ks[4], ks[5], 32, 2)
    w4, b4 = lin(ks[6], ks[7], 2, 1)
    return {"w1": w1, "b1": b1, "w2": w2, "b2": b2,
            "w3": w3, "b3": b3, "w4": w4, "b4": b4}


def reference_forward(x, p):
    """Un-fused JAX reference matching the PyTorch forward (dropout = identity / eval)."""
    h = x @ p["w1"] + p["b1"]
    h = h @ p["w2"] + p["b2"]
    h = h @ p["w3"] + p["b3"]
    h = h @ p["w4"] + p["b4"]
    return jax.nn.sigmoid(h)


if __name__ == "__main__":
    key = jax.random.PRNGKey(0)
    k_x, k_p = jax.random.split(key)

    B = 256
    x = jax.random.normal(k_x, (B, 6), dtype=jnp.float32)
    params = init_params(k_p)

    out = titanic_forward(x, params)          # tile_b heuristic -> 128, grid=(2,), both TCs busy
    out = jax.block_until_ready(out)

    ref = reference_forward(x, params)
    assert out.shape == (B, 1)
    # Composed weights + approx-reciprocal sigmoid: not bitwise-identical to the un-fused reference.
    assert jnp.allclose(out, ref, atol=1e-4, rtol=1e-4), "mismatch vs JAX reference"

    print("KERNEL_OK")
</pallas_src>

<mosaic_0001>
module attributes {stable_mosaic.version = 11 : i64} {
  func.func @titanic_kernel(%arg0: i32, %arg1: memref<128x6xf32, #tpu.memory_space<vmem>>, %arg2: memref<1x6xf32, #tpu.memory_space<vmem>>, %arg3: memref<1x1xf32, #tpu.memory_space<vmem>>, %arg4: memref<128x1xf32, #tpu.memory_space<vmem>>) attributes {dimension_semantics = [#tpu.dimension_semantics<parallel>], iteration_bounds = array<i64: 2>, scalar_prefetch = 0 : i64, scratch_operands = 0 : i64, tpu.core_type = #tpu.core_type<tc>, window_params = [{transform_indices = @transform_0, window_bounds = array<i64: 128, 6>}, {pipeline_mode = #tpu.pipeline_mode<synchronous>, transform_indices = @transform_1, window_bounds = array<i64: 1, 6>}, {pipeline_mode = #tpu.pipeline_mode<synchronous>, transform_indices = @transform_2, window_bounds = array<i64: 1, 1>}, {transform_indices = @transform_3, window_bounds = array<i64: 128, 1>}]} {
    %c0 = arith.constant 0 : index
    %c0_0 = arith.constant 0 : index
    %0 = vector.load %arg1[%c0, %c0_0] : memref<128x6xf32, #tpu.memory_space<vmem>>, vector<128x6xf32>
    %c0_1 = arith.constant 0 : index
    %c0_2 = arith.constant 0 : index
    %1 = vector.load %arg2[%c0_1, %c0_2] : memref<1x6xf32, #tpu.memory_space<vmem>>, vector<1x6xf32>
    %2 = vector.broadcast %1 : vector<1x6xf32> to vector<128x6xf32>
    %3 = arith.mulf %0, %2 : vector<128x6xf32>
    %cst = arith.constant dense<0.000000e+00> : vector<128xf32>
    %4 = vector.multi_reduction <add>, %3, %cst [1] : vector<128x6xf32> to vector<128xf32>
    %5 = vector.shape_cast %4 : vector<128xf32> to vector<128x1xf32>
    %c0_3 = arith.constant 0 : index
    %c0_4 = arith.constant 0 : index
    %6 = vector.load %arg3[%c0_3, %c0_4] : memref<1x1xf32, #tpu.memory_space<vmem>>, vector<1x1xf32>
    %7 = vector.broadcast %6 : vector<1x1xf32> to vector<128x1xf32>
    %8 = arith.addf %5, %7 : vector<128x1xf32>
    %cst_5 = arith.constant -3.000000e+01 : f32
    %cst_6 = arith.constant 3.000000e+01 : f32
    %9 = vector.broadcast %cst_5 : f32 to vector<128x1xf32>
    %10 = arith.maximumf %9, %8 : vector<128x1xf32>
    %11 = vector.broadcast %cst_6 : f32 to vector<128x1xf32>
    %12 = arith.minimumf %11, %10 : vector<128x1xf32>
    %cst_7 = arith.constant 0.000000e+00 : f32
    %13 = vector.broadcast %cst_7 : f32 to vector<128x1xf32>
    %14 = arith.subf %13, %12 : vector<128x1xf32>
    %15 = math.exp %14 : vector<128x1xf32>
    %cst_8 = arith.constant 1.000000e+00 : f32
    %16 = vector.broadcast %cst_8 : f32 to vector<128x1xf32>
    %17 = arith.addf %16, %15 : vector<128x1xf32>
    %18 = tpu.reciprocal %17 {approx = true} : vector<128x1xf32> -> vector<128x1xf32>
    %19 = arith.mulf %17, %18 : vector<128x1xf32>
    %cst_9 = arith.constant 2.000000e+00 : f32
    %20 = vector.broadcast %cst_9 : f32 to vector<128x1xf32>
    %21 = arith.subf %20, %19 : vector<128x1xf32>
    %22 = arith.mulf %18, %21 : vector<128x1xf32>
    %c0_10 = arith.constant 0 : index
    %c0_11 = arith.constant 0 : index
    %23 = vector.load %arg4[%c0_10, %c0_11] : memref<128x1xf32, #tpu.memory_space<vmem>>, vector<128x1xf32>
    tpu.vector_store %arg4[%c0_10, %c0_11], %22 {strides = array<i32>} : memref<128x1xf32, #tpu.memory_space<vmem>>, vector<128x1xf32>,
    return
  }
  func.func @transform_0(%arg0: i32) -> (i32, i32) {
    %c0_i32 = arith.constant 0 : i32
    %c0_i32_0 = arith.constant 0 : i32
    return %arg0, %c0_i32 : i32, i32
  }
  func.func @transform_1(%arg0: i32) -> (i32, i32) {
    %c0_i32 = arith.constant 0 : i32
    %c0_i32_0 = arith.constant 0 : i32
    %c0_i32_1 = arith.constant 0 : i32
    return %c0_i32, %c0_i32_0 : i32, i32
  }
  func.func @transform_2(%arg0: i32) -> (i32, i32) {
    %c0_i32 = arith.constant 0 : i32
    %c0_i32_0 = arith.constant 0 : i32
    %c0_i32_1 = arith.constant 0 : i32
    return %c0_i32, %c0_i32_0 : i32, i32
  }
  func.func @transform_3(%arg0: i32) -> (i32, i32) {
    %c0_i32 = arith.constant 0 : i32
    %c0_i32_0 = arith.constant 0 : i32
    return %arg0, %c0_i32 : i32, i32
  }
}

</mosaic_0001>

<bundles_post_ra>
// kernel: tpu_custom_call.1
= control target key start
LH: loop header
LB: loop body
LE: loop exit
PB: predicated region body
PF: predicated region fallthrough
CT: control target
= control target key end

     0   :  { %s652_s14 = smov 0   ;;  %s765_s0 = inlined_call_operand.vmem [shape: f32[256,6], index: 0, kind: input, shape index: {}]   ;;  %s766_s1 = inlined_call_operand.vmem [shape: f32[1,6], index: 1, kind: input, shape index: {}]   ;;  %s767_s2 = inlined_call_operand.<no memory space> [shape: f32[1,1], index: 2, kind: input, shape index: {}]   ;;  %s768_s3 = inlined_call_operand.vmem [shape: f32[256,1], index: 3, kind: output, shape index: {}]  }
   0x1   :  { %v8_v0 = vstv %s767_s2 }
   0x2   :  { %9 = vst [vmem:[#allocation2] sm:$0x1] %v8_v0 }
   0x3 LB: > { %s520_s15 = sadd.s32 4294967295, %s627_s14   ;;  %p524_p0 = scmp.ge.s32.totalorder %s627_s14, 1  ;;  %s627_s14 = sphi %s652_s14, %s15_s14  }
   0x4   : > { %p140_p1 = scmp.lt.s32.totalorder %s627_s14, 3 }
   0x6   : > { %p141_p2 = pnand %p524_p0, %p140_p1 }
   0x7   : > { %s525_s16 = sshll.u32 (!%p141_p2), %s520_s15, 4  ;;  %v529_v1 = vld [vmem:[%s766_s1] ss:$0 sm:$0xff] (!%p141_p2)  ;;  %vm215_vm0 = vcmask (!%p141_p2), 48128   ;;  %vm447_vm1 = vcmask (!%p141_p2), 7168  }
   0x8   : > { %144 = sbr.rel (%p141_p2) target bundleno = 234 (0xea), region = 32  ;;  %p165_p3 = scmp.lt.s32.totalorder (!%p141_p2), %s525_s16, 31 }
   0x9   : > { %v705_v50 = vld [vmem:[#allocation2] ss:$0 sm:$0xff] (!%p141_p2) }
   0xf   : > { %s770_s16 = smov (!%p165_p3, %s525_s16), 31 }
  0x10   : > { %s526_s2 = sshll.u32 %s770_s16, 3 }
  0x11   : > { %s671_s21 = scalar_lea.vmem %s765_s0, %s526_s2  ;;  %s728_s24 = scalar_lea.vmem %s768_s3, %s526_s2 }
  0x12   : > { %v178_v2 = vld [vmem:[%s671_s21 + $0x10] sm:$0xff]  ;;  %v176_v3 = vld [vmem:[%s671_s21] sm:$0xff]  ;;  %v179_v4 = vld [vmem:[%s671_s21 + $0x18] sm:$0xff] }
  0x13   : > { %v201_v5 = vmul.f32 %v529_v1, %v178_v2  ;;  %v199_v6 = vmul.f32 %v529_v1, %v176_v3  ;;  %v202_v7 = vmul.f32 %v529_v1, %v179_v4  ;;  %v177_v8 = vld [vmem:[%s671_s21 + $0x8] sm:$0xff]  ;;  %v180_v11 = vld [vmem:[%s671_s21 + $0x20] sm:$0xff]  ;;  %v183_v18 = vld [vmem:[%s671_s21 + $0x38] sm:$0xff] }
  0x14   : > { %v200_v9 = vmul.f32 %v529_v1, %v177_v8  ;;  %v181_v10 = vld [vmem:[%s671_s21 + $0x28] sm:$0xff]  ;;  %v203_v17 = vmul.f32 %v529_v1, %v180_v11  ;;  %v182_v19 = vld [vmem:[%s671_s21 + $0x30] sm:$0xff]  ;;  %v206_v22 = vmul.f32 %v529_v1, %v183_v18  ;;  %v184_v25 = vld [vmem:[%s671_s21 + $0x40] sm:$0xff] }
  0x15   : > { %v222_v12 = vsel %vm215_vm0, %v201_v5, 0.0  ;;  %v216_v13 = vsel %vm215_vm0, %v199_v6, 0.0  ;;  %v225_v14 = vsel %vm215_vm0, %v202_v7, 0.0  ;;  %v204_v16 = vmul.f32 %v529_v1, %v181_v10  ;;  %v185_v24 = vld [vmem:[%s671_s21 + $0x48] sm:$0xff]  ;;  %v187_v30 = vld [vmem:[%s671_s21 + $0x58] sm:$0xff]  ;;  %v186_v31 = vld [vmem:[%s671_s21 + $0x50] sm:$0xff] }
  0x16   : > { %223 = vadd.xlane.f32.xlu1 %v222_v12  ;;  %217 = vadd.xlane.f32.xlu0 %v216_v13  ;;  %v219_v15 = vsel %vm215_vm0, %v200_v9, 0.0  ;;  %v228_v21 = vsel %vm215_vm0, %v203_v17, 0.0  ;;  %v205_v23 = vmul.f32 %v529_v1, %v182_v19  ;;  %v237_v26 = vsel %vm215_vm0, %v206_v22, 0.0  ;;  %v189_v36 = vld [vmem:[%s671_s21 + $0x68] sm:$0xff]  ;;  %v188_v37 = vld [vmem:[%s671_s21 + $0x60] sm:$0xff]  ;;  %v191_v42 = vld [vmem:[%s671_s21 + $0x78] sm:$0xff] }
  0x17   : > { %v231_v20 = vsel %vm215_vm0, %v204_v16, 0.0  ;;  %v208_v28 = vmul.f32 %v529_v1, %v185_v24  ;;  %v207_v29 = vmul.f32 %v529_v1, %v184_v25  ;;  %v210_v34 = vmul.f32 %v529_v1, %v187_v30  ;;  %v190_v43 = vld [vmem:[%s671_s21 + $0x70] sm:$0xff] }
  0x18   : > { %v234_v27 = vsel %vm215_vm0, %v205_v23, 0.0  ;;  %v209_v35 = vmul.f32 %v529_v1, %v186_v31  ;;  %v212_v40 = vmul.f32 %v529_v1, %v189_v36  ;;  %v211_v41 = vmul.f32 %v529_v1, %v188_v37 }
  0x19   : > { %v243_v32 = vsel %vm215_vm0, %v208_v28, 0.0  ;;  %v240_v33 = vsel %vm215_vm0, %v207_v29, 0.0  ;;  %v249_v38 = vsel %vm215_vm0, %v210_v34, 0.0  ;;  %v214_v46 = vmul.f32 %v529_v1, %v191_v42 }
  0x1a   : > { %226 = vadd.xlane.f32.xlu1 %v225_v14  ;;  %220 = vadd.xlane.f32.xlu0 %v219_v15  ;;  %v246_v39 = vsel %vm215_vm0, %v209_v35, 0.0  ;;  %v255_v44 = vsel %vm215_vm0, %v212_v40, 0.0  ;;  %v252_v45 = vsel %vm215_vm0, %v211_v41, 0.0  ;;  %v213_v47 = vmul.f32 %v529_v1, %v190_v43 }
  0x1b   : > { %v261_v48 = vsel %vm215_vm0, %v214_v46, 0.0 }
  0x1c   : > { %v258_v49 = vsel %vm215_vm0, %v213_v47, 0.0 }
  0x1e   : > { %232 = vadd.xlane.f32.xlu1 %v231_v20  ;;  %229 = vadd.xlane.f32.xlu0 %v228_v21 }
  0x22   : > { %238 = vadd.xlane.f32.xlu1 %v237_v26  ;;  %235 = vadd.xlane.f32.xlu0 %v234_v27 }
  0x26   : > { %244 = vadd.xlane.f32.xlu1 %v243_v32  ;;  %241 = vadd.xlane.f32.xlu0 %v240_v33 }
  0x2a   : > { %250 = vadd.xlane.f32.xlu1 %v249_v38  ;;  %247 = vadd.xlane.f32.xlu0 %v246_v39 }
  0x2e   : > { %256 = vadd.xlane.f32.xlu1 %v255_v44  ;;  %253 = vadd.xlane.f32.xlu0 %v252_v45 }
  0x32   : > { %262 = vadd.xlane.f32.xlu1 %v261_v48  ;;  %259 = vadd.xlane.f32.xlu0 %v258_v49 }
  0xa3   : > { %v224_v51 = vpop.xlane.xlu1 %223  ;;  %v218_v52 = vpop.xlane.xlu0 %217 }
  0xa4   : > { %v273_v53 = vadd.f32 %v705_v50, %v224_v51  ;;  %v271_v54 = vadd.f32 %v705_v50, %v218_v52 }
  0xa6   : > { %v533_v55 = vclamps-f32 %v273_v53, 30.0  ;;  %v531_v56 = vclamps-f32 %v271_v54, 30.0 }
  0xa7   : > { %v227_v57 = vpop.xlane.xlu1 %226  ;;  %v221_v58 = vpop.xlane.xlu0 %220 }
  0xa8   : > { %v321_v59 = vsub.f32 0.0, %v533_v55  ;;  %v319_v60 = vsub.f32 0.0, %v531_v56  ;;  %v274_v61 = vadd.f32 %v705_v50, %v227_v57  ;;  %v272_v62 = vadd.f32 %v705_v50, %v221_v58 }
  0xaa   : > { %v339_v63 = vmul.f32 1.442695, %v321_v59  ;;  %v335_v0 = vmul.f32 1.442695, %v319_v60  ;;  %v534_v1 = vclamps-f32 %v274_v61, 30.0  ;;  %v532_v2 = vclamps-f32 %v272_v62, 30.0 }
  0xab   : > { %v233_v3 = vpop.xlane.xlu1 %232  ;;  %v230_v4 = vpop.xlane.xlu0 %229 }
  0xac   : > { %557 = vpow2.f32 %v339_v63  ;;  %v322_v5 = vsub.f32 0.0, %v534_v1  ;;  %v320_v6 = vsub.f32 0.0, %v532_v2  ;;  %v276_v7 = vadd.f32 %v705_v50, %v233_v3 }
  0xad   : > { %559 = vpow2.f32 %v335_v0  ;;  %v275_v8 = vadd.f32 %v705_v50, %v230_v4 }
  0xae   : > { %v341_v9 = vmul.f32 1.442695, %v322_v5  ;;  %v337_v10 = vmul.f32 1.442695, %v320_v6  ;;  %v536_v11 = vclamps-f32 %v276_v7, 30.0 }
  0xaf   : > { %v535_v12 = vclamps-f32 %v275_v8, 30.0  ;;  %v239_v13 = vpop.xlane.xlu1 %238  ;;  %v236_v14 = vpop.xlane.xlu0 %235 }
  0xb0   : > { %561 = vpow2.f32 %v341_v9  ;;  %v324_v15 = vsub.f32 0.0, %v536_v11  ;;  %v278_v16 = vadd.f32 %v705_v50, %v239_v13  ;;  %v277_v17 = vadd.f32 %v705_v50, %v236_v14 }
  0xb1   : > { %563 = vpow2.f32 %v337_v10  ;;  %v323_v18 = vsub.f32 0.0, %v535_v12 }
  0xb2   : > { %v345_v19 = vmul.f32 1.442695, %v324_v15  ;;  %v538_v20 = vclamps-f32 %v278_v16, 30.0  ;;  %v537_v21 = vclamps-f32 %v277_v17, 30.0 }
  0xb3   : > { %v343_v22 = vmul.f32 1.442695, %v323_v18  ;;  %v245_v23 = vpop.xlane.xlu1 %244  ;;  %v242_v24 = vpop.xlane.xlu0 %241 }
  0xb4   : > { %565 = vpow2.f32 %v345_v19  ;;  %v326_v25 = vsub.f32 0.0, %v538_v20  ;;  %v325_v26 = vsub.f32 0.0, %v537_v21  ;;  %v280_v27 = vadd.f32 %v705_v50, %v245_v23 }
  0xb5   : > { %567 = vpow2.f32 %v343_v22  ;;  %v279_v28 = vadd.f32 %v705_v50, %v242_v24 }
  0xb6   : > { %v558_v29 = vpop.eup %557  ;;  %v349_v30 = vmul.f32 1.442695, %v326_v25  ;;  %v540_v31 = vclamps-f32 %v280_v27, 30.0  ;;  %v347_v34 = vmul.f32 1.442695, %v325_v26 }
  0xb7   : > { %v560_v32 = vpop.eup %559  ;;  %v369_v33 = vadd.f32 1.0, %v558_v29  ;;  %v539_v35 = vclamps-f32 %v279_v28, 30.0  ;;  %v251_v36 = vpop.xlane.xlu1 %250 }
  0xb8   : > { %v248_v37 = vpop.xlane.xlu0 %247  ;;  %v367_v38 = vadd.f32 1.0, %v560_v32  ;;  %569 = vpow2.f32 %v349_v30  ;;  %v328_v39 = vsub.f32 0.0, %v540_v31  ;;  %v282_v40 = vadd.f32 %v705_v50, %v251_v36 }
  0xb9   : > { %571 = vrcp.f32 %v369_v33  ;;  %v327_v41 = vsub.f32 0.0, %v539_v35  ;;  %v281_v42 = vadd.f32 %v705_v50, %v248_v37 }
  0xba   : > { %v562_v43 = vpop.eup %561  ;;  %573 = vrcp.f32 %v367_v38  ;;  %v353_v44 = vmul.f32 1.442695, %v328_v39  ;;  %v542_v45 = vclamps-f32 %v282_v40, 30.0 }
  0xbb   : > { %v564_v46 = vpop.eup %563  ;;  %v370_v47 = vadd.f32 1.0, %v562_v43  ;;  %575 = vpow2.f32 %v347_v34  ;;  %v351_v48 = vmul.f32 1.442695, %v327_v41  ;;  %v541_v49 = vclamps-f32 %v281_v42, 30.0  ;;  %v257_v51 = vpop.xlane.xlu1 %256 }
  0xbc   : > { %v254_v52 = vpop.xlane.xlu0 %253  ;;  %v368_v53 = vadd.f32 1.0, %v564_v46  ;;  %577 = vpow2.f32 %v353_v44  ;;  %v330_v54 = vsub.f32 0.0, %v542_v45  ;;  %v284_v55 = vadd.f32 %v705_v50, %v257_v51 }
  0xbd   : > { %579 = vrcp.f32 %v370_v47  ;;  %v329_v56 = vsub.f32 0.0, %v541_v49  ;;  %v283_v57 = vadd.f32 %v705_v50, %v254_v52 }
  0xbe   : > { %v566_v58 = vpop.eup %565  ;;  %581 = vrcp.f32 %v368_v53  ;;  %v357_v59 = vmul.f32 1.442695, %v330_v54  ;;  %v544_v60 = vclamps-f32 %v284_v55, 30.0 }
  0xbf   : > { %v568_v61 = vpop.eup %567  ;;  %v372_v62 = vadd.f32 1.0, %v566_v58  ;;  %583 = vpow2.f32 %v351_v48  ;;  %v355_v63 = vmul.f32 1.442695, %v329_v56  ;;  %v543_v0 = vclamps-f32 %v283_v57, 30.0  ;;  %v263_v1 = vpop.xlane.xlu1 %262 }
  0xc0   : > { %v260_v2 = vpop.xlane.xlu0 %259  ;;  %v371_v3 = vadd.f32 1.0, %v568_v61  ;;  %585 = vpow2.f32 %v357_v59  ;;  %v332_v4 = vsub.f32 0.0, %v544_v60  ;;  %v286_v5 = vadd.f32 %v705_v50, %v263_v1 }
  0xc1   : > { %587 = vrcp.f32 %v372_v62  ;;  %v331_v6 = vsub.f32 0.0, %v543_v0  ;;  %v285_v7 = vadd.f32 %v705_v50, %v260_v2 }
  0xc2   : > { %v570_v8 = vpop.eup %569  ;;  %589 = vrcp.f32 %v371_v3  ;;  %v361_v9 = vmul.f32 1.442695, %v332_v4  ;;  %v546_v10 = vclamps-f32 %v286_v5, 30.0 }
  0xc3   : > { %v572_v11 = vpop.eup %571  ;;  %v374_v12 = vadd.f32 1.0, %v570_v8  ;;  %591 = vpow2.f32 %v355_v63  ;;  %v359_v13 = vmul.f32 1.442695, %v331_v6  ;;  %v545_v14 = vclamps-f32 %v285_v7, 30.0 }
  0xc4   : > { %v574_v15 = vpop.eup %573  ;;  %v401_v16 = vmul.f32 %v572_v11, %v369_v33  ;;  %593 = vpow2.f32 %v361_v9  ;;  %v334_v17 = vsub.f32 0.0, %v546_v10 }
  0xc5   : > { %v576_v18 = vpop.eup %575  ;;  %v399_v19 = vmul.f32 %v574_v15, %v367_v38  ;;  %595 = vrcp.f32 %v374_v12  ;;  %v333_v20 = vsub.f32 0.0, %v545_v14 }
  0xc6   : > { %v578_v21 = vpop.eup %577  ;;  %v417_v50 = vsub.f32 2.0, %v401_v16  ;;  %v373_v22 = vadd.f32 1.0, %v576_v18  ;;  %597 = vpow2.f32 %v359_v13  ;;  %v365_v23 = vmul.f32 1.442695, %v334_v17 }
  0xc7   : > { %v580_v24 = vpop.eup %579  ;;  %v415_v25 = vsub.f32 2.0, %v399_v19  ;;  %v376_v26 = vadd.f32 1.0, %v578_v21  ;;  %v363_v27 = vmul.f32 1.442695, %v333_v20 }
  0xc8   : > { %v582_v28 = vpop.eup %581  ;;  %v433_v29 = vmul.f32 %v572_v11, %v417_v50  ;;  %v402_v30 = vmul.f32 %v580_v24, %v370_v47  ;;  %599 = vrcp.f32 %v373_v22 }
  0xc9   : > { %v584_v31 = vpop.eup %583  ;;  %v431_v32 = vmul.f32 %v574_v15, %v415_v25  ;;  %v400_v33 = vmul.f32 %v582_v28, %v368_v53  ;;  %601 = vrcp.f32 %v376_v26 }
  0xca   : > { %v586_v34 = vpop.eup %585  ;;  %450 = vst.msk [vmem:[%s728_s24 + $0x10] sm:$0xff] %vm447_vm1, %v433_v29  ;;  %v418_v35 = vsub.f32 2.0, %v402_v30  ;;  %v375_v36 = vadd.f32 1.0, %v584_v31  ;;  %603 = vpow2.f32 %v365_v23 }
  0xcb   : > { %v588_v37 = vpop.eup %587  ;;  %448 = vst.msk [vmem:[%s728_s24] sm:$0xff] %vm447_vm1, %v431_v32  ;;  %v416_v38 = vsub.f32 2.0, %v400_v33  ;;  %v378_v39 = vadd.f32 1.0, %v586_v34  ;;  %605 = vpow2.f32 %v363_v27 }
  0xcc   : > { %v590_v40 = vpop.eup %589  ;;  %v434_v41 = vmul.f32 %v580_v24, %v418_v35  ;;  %v404_v42 = vmul.f32 %v588_v37, %v372_v62  ;;  %607 = vrcp.f32 %v375_v36 }
  0xcd   : > { %v592_v43 = vpop.eup %591  ;;  %v432_v44 = vmul.f32 %v582_v28, %v416_v38  ;;  %v403_v45 = vmul.f32 %v590_v40, %v371_v3  ;;  %609 = vrcp.f32 %v378_v39 }
  0xce   : > { %v594_v46 = vpop.eup %593  ;;  %451 = vst.msk [vmem:[%s728_s24 + $0x18] sm:$0xff] %vm447_vm1, %v434_v41  ;;  %v420_v47 = vsub.f32 2.0, %v404_v42  ;;  %v377_v48 = vadd.f32 1.0, %v592_v43 }
  0xcf   : > { %v596_v49 = vpop.eup %595  ;;  %449 = vst.msk [vmem:[%s728_s24 + $0x8] sm:$0xff] %vm447_vm1, %v432_v44  ;;  %v419_v51 = vsub.f32 2.0, %v403_v45  ;;  %v380_v52 = vadd.f32 1.0, %v594_v46 }
  0xd0   : > { %v598_v53 = vpop.eup %597  ;;  %v436_v54 = vmul.f32 %v588_v37, %v420_v47  ;;  %v406_v55 = vmul.f32 %v596_v49, %v374_v12  ;;  %611 = vrcp.f32 %v377_v48 }
  0xd1   : > { %v435_v56 = vmul.f32 %v590_v40, %v419_v51  ;;  %613 = vrcp.f32 %v380_v52  ;;  %v379_v57 = vadd.f32 1.0, %v598_v53 }
  0xd2   : > { %v600_v58 = vpop.eup %599  ;;  %453 = vst.msk [vmem:[%s728_s24 + $0x28] sm:$0xff] %vm447_vm1, %v436_v54  ;;  %v422_v59 = vsub.f32 2.0, %v406_v55 }
  0xd3   : > { %v602_v60 = vpop.eup %601  ;;  %452 = vst.msk [vmem:[%s728_s24 + $0x20] sm:$0xff] %vm447_vm1, %v435_v56  ;;  %v405_v61 = vmul.f32 %v600_v58, %v373_v22  ;;  %615 = vrcp.f32 %v379_v57 }
  0xd4   : > { %v604_v62 = vpop.eup %603  ;;  %v438_v63 = vmul.f32 %v596_v49, %v422_v59  ;;  %v408_v0 = vmul.f32 %v602_v60, %v376_v26 }
  0xd5   : > { %v606_v1 = vpop.eup %605  ;;  %v421_v2 = vsub.f32 2.0, %v405_v61  ;;  %v382_v3 = vadd.f32 1.0, %v604_v62 }
  0xd6   : > { %v608_v4 = vpop.eup %607  ;;  %455 = vst.msk [vmem:[%s728_s24 + $0x38] sm:$0xff] %vm447_vm1, %v438_v63  ;;  %v424_v5 = vsub.f32 2.0, %v408_v0  ;;  %v381_v6 = vadd.f32 1.0, %v606_v1 }
  0xd7   : > { %v610_v7 = vpop.eup %609  ;;  %v437_v8 = vmul.f32 %v600_v58, %v421_v2  ;;  %v407_v9 = vmul.f32 %v608_v4, %v375_v36  ;;  %617 = vrcp.f32 %v382_v3 }
  0xd8   : > { %v440_v10 = vmul.f32 %v602_v60, %v424_v5  ;;  %v410_v11 = vmul.f32 %v610_v7, %v378_v39  ;;  %619 = vrcp.f32 %v381_v6 }
  0xd9   : > { %454 = vst.msk [vmem:[%s728_s24 + $0x30] sm:$0xff] %vm447_vm1, %v437_v8  ;;  %v423_v12 = vsub.f32 2.0, %v407_v9 }
  0xda   : > { %v612_v13 = vpop.eup %611  ;;  %457 = vst.msk [vmem:[%s728_s24 + $0x48] sm:$0xff] %vm447_vm1, %v440_v10  ;;  %v426_v14 = vsub.f32 2.0, %v410_v11 }
  0xdb   : > { %v614_v15 = vpop.eup %613  ;;  %v439_v16 = vmul.f32 %v608_v4, %v423_v12  ;;  %v409_v17 = vmul.f32 %v612_v13, %v377_v48 }
  0xdc   : > { %v442_v18 = vmul.f32 %v610_v7, %v426_v14  ;;  %v412_v19 = vmul.f32 %v614_v15, %v380_v52 }
  0xdd   : > { %v616_v20 = vpop.eup %615  ;;  %456 = vst.msk [vmem:[%s728_s24 + $0x40] sm:$0xff] %vm447_vm1, %v439_v16  ;;  %v425_v21 = vsub.f32 2.0, %v409_v17 }
  0xde   : > { %459 = vst.msk [vmem:[%s728_s24 + $0x58] sm:$0xff] %vm447_vm1, %v442_v18  ;;  %v428_v50 = vsub.f32 2.0, %v412_v19  ;;  %v411_v22 = vmul.f32 %v616_v20, %v379_v57 }
  0xdf   : > { %v441_v23 = vmul.f32 %v612_v13, %v425_v21 }
  0xe0   : > { %v444_v24 = vmul.f32 %v614_v15, %v428_v50  ;;  %v427_v25 = vsub.f32 2.0, %v411_v22 }
  0xe1   : > { %v618_v26 = vpop.eup %617  ;;  %458 = vst.msk [vmem:[%s728_s24 + $0x50] sm:$0xff] %vm447_vm1, %v441_v23 }
  0xe2   : > { %v620_v27 = vpop.eup %619  ;;  %461 = vst.msk [vmem:[%s728_s24 + $0x68] sm:$0xff] %vm447_vm1, %v444_v24  ;;  %v443_v28 = vmul.f32 %v616_v20, %v427_v25  ;;  %v414_v29 = vmul.f32 %v618_v26, %v382_v3 }
  0xe3   : > { %v413_v30 = vmul.f32 %v620_v27, %v381_v6 }
  0xe4   : > { %460 = vst.msk [vmem:[%s728_s24 + $0x60] sm:$0xff] %vm447_vm1, %v443_v28  ;;  %v430_v31 = vsub.f32 2.0, %v414_v29 }
  0xe5   : > { %v429_v32 = vsub.f32 2.0, %v413_v30 }
  0xe6   : > { %v446_v33 = vmul.f32 %v618_v26, %v430_v31 }
  0xe7   : > { %v445_v34 = vmul.f32 %v620_v27, %v429_v32 }
  0xe8   : > { %463 = vst.msk [vmem:[%s728_s24 + $0x78] sm:$0xff] %vm447_vm1, %v446_v33 }
  0xe9   : > { %462 = vst.msk [vmem:[%s728_s24 + $0x70] sm:$0xff] %vm447_vm1, %v445_v34 }
  0xea PF: > { %s15_s14 = sadd.s32 1, %s627_s14  }
  0xeb   : > { %p12_p4 = scmp.ge.s32.totalorder %s15_s14, 4  }
  0xed   :  { %14 = sbr.rel (!%p12_p4) target bundleno = 3 (0x3), region = 62 }

</bundles_post_ra>
